<compile_context>
chip_gen: v6e
topology: v6e:2x2x1
jax: 0.10.0
libtpu: 0.0.40
codegen_flags: <defaults>
</compile_context>

<pallas_src>
import math

import jax
import jax.numpy as jnp
from jax.experimental import pallas as pl
from jax.experimental.pallas import tpu as pltpu


def make_pos_embedding(emb_size: int, maxlen: int = 5000) -> jnp.ndarray:
    """Builds the (maxlen, 1, emb_size) sinusoidal table exactly like __init__."""
    den = jnp.exp(-jnp.arange(0, emb_size, 2, dtype=jnp.float32)
                  * (math.log(10000.0) / emb_size))
    pos = jnp.arange(0, maxlen, dtype=jnp.float32).reshape(maxlen, 1)
    pe = jnp.zeros((maxlen, emb_size), dtype=jnp.float32)
    pe = pe.at[:, 0::2].set(jnp.sin(pos * den))
    pe = pe.at[:, 1::2].set(jnp.cos(pos * den))
    return pe[:, None, :]  # (maxlen, 1, emb_size)


def _pe_add_kernel(x_ref, pos_ref, o_ref):
    # x_ref:   (TS, B, E)
    # pos_ref: (TS, E)     (size-1 batch dim squeezed away by the BlockSpec)
    # Broadcast pos over the batch axis on-chip; keep the store dtype exact.
    o_ref[...] = (x_ref[...] + pos_ref[...][:, None, :]).astype(o_ref.dtype)


def _round_up(x: int, m: int) -> int:
    return ((x + m - 1) // m) * m


def positional_encoding_forward(token_embedding: jnp.ndarray,
                                pos_embedding: jnp.ndarray,
                                *,
                                max_tile_s: int = 512,
                                vmem_limit_bytes: int = 48 * 1024 * 1024
                                ) -> jnp.ndarray:
    """Eval-mode forward: token_embedding + pos_embedding[:S] (dropout = identity)."""
    S, B, E = token_embedding.shape
    maxlen = pos_embedding.shape[0]
    dtype = token_embedding.dtype
    itemsize = jnp.dtype(dtype).itemsize

    # Ship the pos table in the activation dtype (halves pos DMA for bf16 x).
    pos = pos_embedding.astype(dtype)  # (maxlen, 1, E) — no [:S] slice/copy here.

    # Size the sequence tile from the double-buffered per-step VMEM footprint:
    #   2 buffers x (x_in tile + x_out tile + pos tile)
    bytes_per_seq_row = 2 * (2 * B * E + E) * itemsize
    budget = vmem_limit_bytes // 2          # leave headroom under the scoped limit
    tile_s = max(8, min(max_tile_s, budget // max(bytes_per_seq_row, 1)))
    tile_s = min(tile_s, _round_up(S, 8))   # never bigger than (rounded) S
    tile_s = _round_up(tile_s, 8)           # sublane-friendly seq tile for the pos block

    # Pad the seq axis so the grid tiles it exactly; slice the result back below.
    s_pad = _round_up(S, tile_s)
    x = token_embedding
    if s_pad != S:
        x = jnp.pad(x, ((0, s_pad - S), (0, 0), (0, 0)))
    if maxlen < s_pad:  # only possible when S is within one tile of maxlen
        pos = jnp.pad(pos, ((0, s_pad - maxlen), (0, 0), (0, 0)))

    out = pl.pallas_call(
        _pe_add_kernel,
        out_shape=jax.ShapeDtypeStruct((s_pad, B, E), dtype),
        grid_spec=pltpu.PrefetchScalarGridSpec(
            num_scalar_prefetch=0,
            grid=(s_pad // tile_s,),
            in_specs=[
                pl.BlockSpec((tile_s, B, E), lambda i: (i, 0, 0)),
                # Squeeze the size-1 batch dim: kernel sees a (tile_s, E) pos tile.
                pl.BlockSpec((tile_s, pl.Squeezed(), E), lambda i: (i, 0, 0)),
            ],
            out_specs=pl.BlockSpec((tile_s, B, E), lambda i: (i, 0, 0)),
        ),
        compiler_params=pltpu.CompilerParams(
            dimension_semantics=("parallel",),   # megacore-shard seq blocks (v7x: 2 TCs)
            vmem_limit_bytes=vmem_limit_bytes,   # raise above v5e's 16 MiB scoped default
        ),
    )(x, pos)

    return out[:S] if s_pad != S else out


if __name__ == "__main__":
    # Small shapes consistent with the module: (seq, batch, emb_size).
    # E = 128 keeps the output lane-dense (unmasked full-vreg stores).
    S, B, E = 16, 4, 128
    MAXLEN = 64
    DROPOUT_P = 0.1  # unused in eval mode (identity)

    key = jax.random.PRNGKey(0)
    x = jax.random.normal(key, (S, B, E), dtype=jnp.float32)

    pos_embedding = make_pos_embedding(E, maxlen=MAXLEN)

    out = positional_encoding_forward(x, pos_embedding)
    out = jax.block_until_ready(out)

    # Pure-JAX reference (eval mode: dropout is identity)
    ref = x + pos_embedding[:S]
    assert out.shape == (S, B, E)
    assert jnp.allclose(out, ref, atol=1e-6, rtol=1e-6), "mismatch vs reference"

    print("KERNEL_OK")
</pallas_src>

<mosaic_0001>
module attributes {stable_mosaic.version = 11 : i64} {
  func.func @_pe_add_kernel(%arg0: i32, %arg1: memref<16x4x128xf32, #tpu.memory_space<vmem>>, %arg2: memref<16x1x128xf32, #tpu.memory_space<vmem>>, %arg3: memref<16x4x128xf32, #tpu.memory_space<vmem>>) attributes {dimension_semantics = [#tpu.dimension_semantics<parallel>], iteration_bounds = array<i64: 1>, scalar_prefetch = 0 : i64, scratch_operands = 0 : i64, tpu.core_type = #tpu.core_type<tc>, window_params = [{transform_indices = @transform_0, window_bounds = array<i64: 16, 4, 128>}, {transform_indices = @transform_1, window_bounds = array<i64: 16, 1, 128>}, {transform_indices = @transform_2, window_bounds = array<i64: 16, 4, 128>}]} {
    %c0 = arith.constant 0 : index
    %c0_0 = arith.constant 0 : index
    %c0_1 = arith.constant 0 : index
    %0 = vector.load %arg1[%c0, %c0_0, %c0_1] : memref<16x4x128xf32, #tpu.memory_space<vmem>>, vector<16x4x128xf32>
    %c0_2 = arith.constant 0 : index
    %c0_3 = arith.constant 0 : index
    %c0_4 = arith.constant 0 : index
    %1 = vector.load %arg2[%c0_2, %c0_3, %c0_4] : memref<16x1x128xf32, #tpu.memory_space<vmem>>, vector<16x1x128xf32>
    %2 = vector.shape_cast %1 : vector<16x1x128xf32> to vector<16x128xf32>
    %3 = vector.shape_cast %2 : vector<16x128xf32> to vector<16x1x128xf32>
    %4 = vector.broadcast %3 : vector<16x1x128xf32> to vector<16x4x128xf32>
    %5 = arith.addf %0, %4 : vector<16x4x128xf32>
    %c0_5 = arith.constant 0 : index
    %c0_6 = arith.constant 0 : index
    %c0_7 = arith.constant 0 : index
    %6 = vector.load %arg3[%c0_5, %c0_6, %c0_7] : memref<16x4x128xf32, #tpu.memory_space<vmem>>, vector<16x4x128xf32>
    tpu.vector_store %arg3[%c0_5, %c0_6, %c0_7], %5 {strides = array<i32>} : memref<16x4x128xf32, #tpu.memory_space<vmem>>, vector<16x4x128xf32>,
    return
  }
  func.func @transform_0(%arg0: i32) -> (i32, i32, i32) {
    %c0_i32 = arith.constant 0 : i32
    %c0_i32_0 = arith.constant 0 : i32
    %c0_i32_1 = arith.constant 0 : i32
    return %arg0, %c0_i32, %c0_i32_0 : i32, i32, i32
  }
  func.func @transform_1(%arg0: i32) -> (i32, i32, i32) {
    %c0_i32 = arith.constant 0 : i32
    %c0_i32_0 = arith.constant 0 : i32
    %c0_i32_1 = arith.constant 0 : i32
    return %arg0, %c0_i32, %c0_i32_0 : i32, i32, i32
  }
  func.func @transform_2(%arg0: i32) -> (i32, i32, i32) {
    %c0_i32 = arith.constant 0 : i32
    %c0_i32_0 = arith.constant 0 : i32
    %c0_i32_1 = arith.constant 0 : i32
    return %arg0, %c0_i32, %c0_i32_0 : i32, i32, i32
  }
}

</mosaic_0001>

<bundles_post_ra>
// kernel: tpu_custom_call.1
= control target key start
LH: loop header
LB: loop body
LE: loop exit
PB: predicated region body
PF: predicated region fallthrough
CT: control target
= control target key end

     0   :  { %7 = vsyncpa [#allocation3], 0  ;;  %s347_s0 = inlined_call_operand.hbm [shape: f32[16,4,128], index: 0, kind: input, shape index: {}]   ;;  %s348_s1 = inlined_call_operand.hbm [shape: f32[64,1,128], index: 1, kind: input, shape index: {}]   ;;  %s349_s2 = inlined_call_operand.hbm [shape: f32[16,4,128], index: 2, kind: output, shape index: {}]  }
   0x1   :  { %8 = vsyncpa [#allocation6], 0 }
   0x2   :  { %9 = vsyncpa [#allocation4], 0  ;;  %s307_s9 = smov [#allocation2]  }
   0x3   :  { %s15_s10 = sshll.u32 %s307_s9, 4  ;;  %s16_s10 = int_to_ptr.vmem [resolvable:$true] %s15_s10 }
   0x4   :  { %s249_s11 = scalar_lea.vmem %s16_s10, 1024  ;;  %p254_p1 = scmp.lt.s32.totalorder %s16_s10, %s16_s10 }
   0x5   :  { %p250_p0 = scmp.ne.s32.totalorder %s16_s10, %s249_s11  ;;  %p255_p2 = scmp.lt.s32.totalorder %s249_s11, %s249_s11 }
   0x7   :  { %p256_p3 = por %p255_p2, %p254_p1 }
   0x9   :  { %p257_p4 = pnand %p256_p3, %p250_p0 }
   0xb   :  { %260 = shalt.err (!%p257_p4)
}
   0xc   :  { %s308_s12 = smov 64   ;;  %s309_s13 = smov 4  }
   0xd   :  { %21 = dma.hbm_to_vmem [thread:$0]  %s347_s0, 1024, %s16_s10, [#allocation3], %s308_s12, %s308_s12, %s309_s13  }
   0xe   :  { %s310_s16 = smov [#allocation5]  }
   0xf   :  { %s27_s17 = sshll.u32 %s310_s16, 4  ;;  %s28_s17 = int_to_ptr.vmem [resolvable:$true] %s27_s17 }
  0x10   :  { %s269_s18 = scalar_lea.vmem %s28_s17, 256  ;;  %p274_p6 = scmp.lt.s32.totalorder %s28_s17, %s28_s17 }
  0x11   :  { %p270_p5 = scmp.ne.s32.totalorder %s28_s17, %s269_s18  ;;  %p275_p7 = scmp.lt.s32.totalorder %s269_s18, %s269_s18 }
  0x13   :  { %p276_p8 = por %p275_p7, %p274_p6 }
  0x15   :  { %p277_p9 = pnand %p276_p8, %p270_p5 }
  0x17   :  { %280 = shalt.err (!%p277_p9)
}
  0x18   :  { %s311_s19 = smov 16   ;;  %s312_s20 = smov 1  }
  0x19   :  { %33 = dma.hbm_to_vmem [thread:$0]  %s348_s1, 256, %s28_s17, [#allocation6], %s311_s19, %s311_s19, %s312_s20  }
  0x1a   :  { %301 = dma.done.wait [#allocation3], 1024  }
  0x1b   :  { %302 = vsyncadd [#allocation3], 4294966272 }
  0x1c   :  { %303 = dma.done.wait [#allocation6], 256  }
  0x1d   :  { %304 = vsyncadd [#allocation6], 4294967040  ;;  %s313_s0 = smov [#allocation7]   ;;  %v40_v0 = vld [vmem:[#allocation2] sm:$0xf] }
  0x1e   :  { %s338_s23 = sshll.u32 %s313_s0, 4  ;;  %v218_v1 = vld [vmem:[#allocation5] ss:$0 sm:$0xff]  ;;  %v41_v2 = vld [vmem:[#allocation2 + $0x4] sm:$0xf]  ;;  %s206_s23 = int_to_ptr.vmem [resolvable:$true] %s338_s23 }
  0x1f   :  { %v168_v3 = vadd.f32 %v218_v1, %v40_v0  ;;  %v219_v4 = vld [vmem:[#allocation5 + $0x1] ss:$0 sm:$0xff]  ;;  %v42_v5 = vld [vmem:[#allocation2 + $0x8] sm:$0xf]  ;;  %v220_v6 = vld [vmem:[#allocation5 + $0x2] ss:$0 sm:$0xff]  ;;  %p286_p11 = scmp.lt.s32.totalorder %s206_s23, %s206_s23 }
  0x20   :  { %v169_v7 = vadd.f32 %v219_v4, %v41_v2  ;;  %v170_v8 = vadd.f32 %v220_v6, %v42_v5  ;;  %v43_v9 = vld [vmem:[#allocation2 + $0xc] sm:$0xf]  ;;  %v221_v10 = vld [vmem:[#allocation5 + $0x3] ss:$0 sm:$0xff]  ;;  %v44_v11 = vld [vmem:[#allocation2 + $0x10] sm:$0xf] }
  0x21   :  { %184 = vst [vmem:[#allocation7] sm:$0xf] %v168_v3  ;;  %v171_v12 = vadd.f32 %v221_v10, %v43_v9  ;;  %v222_v13 = vld [vmem:[#allocation5 + $0x4] ss:$0 sm:$0xff]  ;;  %v45_v14 = vld [vmem:[#allocation2 + $0x14] sm:$0xf] }
  0x22   :  { %v223_v15 = vld [vmem:[#allocation5 + $0x5] ss:$0 sm:$0xff]  ;;  %185 = vst [vmem:[#allocation7 + $0x4] sm:$0xf] %v169_v7  ;;  %186 = vst [vmem:[#allocation7 + $0x8] sm:$0xf] %v170_v8  ;;  %v172_v16 = vadd.f32 %v222_v13, %v44_v11 }
  0x23   :  { %v173_v17 = vadd.f32 %v223_v15, %v45_v14  ;;  %v46_v18 = vld [vmem:[#allocation2 + $0x18] sm:$0xf]  ;;  %v224_v19 = vld [vmem:[#allocation5 + $0x6] ss:$0 sm:$0xff]  ;;  %v47_v20 = vld [vmem:[#allocation2 + $0x1c] sm:$0xf] }
  0x24   :  { %187 = vst [vmem:[#allocation7 + $0xc] sm:$0xf] %v171_v12  ;;  %v174_v21 = vadd.f32 %v224_v19, %v46_v18  ;;  %v225_v22 = vld [vmem:[#allocation5 + $0x7] ss:$0 sm:$0xff]  ;;  %v48_v23 = vld [vmem:[#allocation2 + $0x20] sm:$0xf] }
  0x25   :  { %v226_v24 = vld [vmem:[#allocation5 + $0x8] ss:$0 sm:$0xff]  ;;  %188 = vst [vmem:[#allocation7 + $0x10] sm:$0xf] %v172_v16  ;;  %189 = vst [vmem:[#allocation7 + $0x14] sm:$0xf] %v173_v17  ;;  %v175_v25 = vadd.f32 %v225_v22, %v47_v20 }
  0x26   :  { %v176_v26 = vadd.f32 %v226_v24, %v48_v23  ;;  %v49_v27 = vld [vmem:[#allocation2 + $0x24] sm:$0xf]  ;;  %v227_v28 = vld [vmem:[#allocation5 + $0x9] ss:$0 sm:$0xff]  ;;  %190 = vst [vmem:[#allocation7 + $0x18] sm:$0xf] %v174_v21 }
  0x27   :  { %v50_v29 = vld [vmem:[#allocation2 + $0x28] sm:$0xf]  ;;  %v177_v30 = vadd.f32 %v227_v28, %v49_v27  ;;  %v51_v32 = vld [vmem:[#allocation2 + $0x2c] sm:$0xf]  ;;  %191 = vst [vmem:[#allocation7 + $0x1c] sm:$0xf] %v175_v25 }
  0x28   :  { %v228_v31 = vld [vmem:[#allocation5 + $0xa] ss:$0 sm:$0xff]  ;;  %v229_v33 = vld [vmem:[#allocation5 + $0xb] ss:$0 sm:$0xff]  ;;  %192 = vst [vmem:[#allocation7 + $0x20] sm:$0xf] %v176_v26 }
  0x29   :  { %v178_v34 = vadd.f32 %v228_v31, %v50_v29  ;;  %v179_v35 = vadd.f32 %v229_v33, %v51_v32  ;;  %v52_v36 = vld [vmem:[#allocation2 + $0x30] sm:$0xf]  ;;  %v230_v37 = vld [vmem:[#allocation5 + $0xc] ss:$0 sm:$0xff]  ;;  %v53_v38 = vld [vmem:[#allocation2 + $0x34] sm:$0xf] }
  0x2a   :  { %193 = vst [vmem:[#allocation7 + $0x24] sm:$0xf] %v177_v30  ;;  %v180_v39 = vadd.f32 %v230_v37, %v52_v36  ;;  %v231_v40 = vld [vmem:[#allocation5 + $0xd] ss:$0 sm:$0xff]  ;;  %v54_v41 = vld [vmem:[#allocation2 + $0x38] sm:$0xf] }
  0x2b   :  { %v232_v42 = vld [vmem:[#allocation5 + $0xe] ss:$0 sm:$0xff]  ;;  %194 = vst [vmem:[#allocation7 + $0x28] sm:$0xf] %v178_v34  ;;  %195 = vst [vmem:[#allocation7 + $0x2c] sm:$0xf] %v179_v35  ;;  %v181_v43 = vadd.f32 %v231_v40, %v53_v38 }
  0x2c   :  { %v182_v44 = vadd.f32 %v232_v42, %v54_v41  ;;  %v55_v45 = vld [vmem:[#allocation2 + $0x3c] sm:$0xf]  ;;  %v233_v46 = vld [vmem:[#allocation5 + $0xf] ss:$0 sm:$0xff]  ;;  %196 = vst [vmem:[#allocation7 + $0x30] sm:$0xf] %v180_v39 }
  0x2d   :  { %v183_v47 = vadd.f32 %v233_v46, %v55_v45  ;;  %197 = vst [vmem:[#allocation7 + $0x34] sm:$0xf] %v181_v43  ;;  %s281_s1 = scalar_lea.vmem %s206_s23, 1024 }
  0x2e   :  { %198 = vst [vmem:[#allocation7 + $0x38] sm:$0xf] %v182_v44  ;;  %p282_p10 = scmp.ne.s32.totalorder %s206_s23, %s281_s1  ;;  %p287_p12 = scmp.lt.s32.totalorder %s281_s1, %s281_s1 }
  0x2f   :  { %199 = vst [vmem:[#allocation7 + $0x3c] sm:$0xf] %v183_v47 }
  0x30   :  { %p288_p13 = por %p287_p12, %p286_p11 }
  0x32   :  { %p289_p0 = pnand %p288_p13, %p282_p10 }
  0x34   :  { %292 = shalt.err (!%p289_p0)
}
  0x35   :  { %211 = dma.vmem_to_hbm [thread:$0]  %s206_s23, 1024, %s349_s2, [#allocation4], %s308_s12, %s308_s12, %s309_s13  }
  0x36   :  { %305 = dma.done.wait [#allocation4], 1024  }
  0x37   :  { %306 = vsyncadd [#allocation4], 4294966272 }
  0x38   :  { %215 = vsyncpa [#allocation3], 1 }
  0x39   :  { %216 = vsyncpa [#allocation6], 1 }
  0x3a   :  { %217 = vsyncpa [#allocation4], 1 }

</bundles_post_ra>
